<compile_context>
chip_gen: v7x
topology: tpu7x:2x2x1
jax: 0.10.0
libtpu: 0.0.40
codegen_flags: <defaults>
</compile_context>

<pallas_src>
import functools

import jax
import jax.numpy as jnp
from jax import lax
from jax.experimental import pallas as pl
from jax.experimental.pallas import tpu as pltpu


def _mlm_kernel(y_ref, t_ref, o_ref, *, n_valid, row_tile, tiles_per_chunk):
    """One batch-tile of the min-margin reduction.

    y_ref: (TN, C) logits tile (input dtype), t_ref: (TN, 1) int32 targets,
    o_ref: (1, 1, 1) f32 resident per-chunk running-min accumulator.
    """
    p = pl.program_id(0)   # chunk (parallel)
    i = pl.program_id(1)   # tile within chunk (arbitrary / reduction)

    @pl.when(i == 0)
    def _init():
        o_ref[...] = jnp.full(o_ref.shape, jnp.inf, dtype=o_ref.dtype)

    # bf16/f32 stay in native dtype through the selects + per-row max; other
    # dtypes are upcast to f32.  The max is order selection, so casting only the
    # per-row winners to f32 afterwards is bit-exact.
    native = (y_ref.dtype == jnp.float32) or (y_ref.dtype == jnp.bfloat16)
    y = y_ref[...] if native else y_ref[...].astype(jnp.float32)   # (TN, C)
    t = t_ref[...]                                                  # (TN, 1) i32
    tn, c = y.shape

    # One iota + one compare reused for both selects.
    col_ids = lax.broadcasted_iota(jnp.int32, (tn, c), 1)
    is_target = col_ids == t                                        # (TN, C)
    neg_inf = jnp.asarray(-jnp.inf, dtype=y.dtype)

    # Target logit per row (exactly one match -> max picks it, robustly).
    correct = jnp.max(jnp.where(is_target, y, neg_inf),
                      axis=1, keepdims=True).astype(jnp.float32)
    # Max over the non-target ("wrong") logits per row.
    wrong_max = jnp.max(jnp.where(is_target, neg_inf, y),
                        axis=1, keepdims=True).astype(jnp.float32)
    margin = correct - wrong_max                                    # (TN, 1) f32

    # Mask rows past the end of the batch (ragged last block / clamped tiles).
    tile_idx = p * tiles_per_chunk + i
    row_ids = tile_idx * row_tile + lax.broadcasted_iota(jnp.int32, (tn, 1), 0)
    margin = jnp.where(row_ids < n_valid, margin, jnp.float32(jnp.inf))

    o_ref[...] = jnp.minimum(o_ref[...], jnp.min(margin))


def _vmem_ceiling_bytes() -> int:
    """Generation-aware VMEM budget ceiling (leave ~25% headroom)."""
    try:
        info = pltpu.get_tpu_info()
        cap = int(getattr(info, "vmem_capacity_bytes", 0))
        if cap > 0:
            return min(int(cap * 3 // 4), 100 << 20)
    except Exception:
        pass
    return 48 << 20   # safe even on v7x's 64 MiB VMEM


def multi_label_margin(logits: jax.Array,
                       target: jax.Array,
                       *,
                       max_row_tile: int | None = None) -> jax.Array:
    """Pallas TPU implementation of MultiLabelMargin.forward.

    logits: [N, C] float32/bfloat16
    target: [N] integer class indices in [0, C)
    returns: scalar float32
    """
    n, c = logits.shape
    t_col = target.astype(jnp.int32).reshape(n, 1)   # [N, 1]
    itemsize = jnp.dtype(logits.dtype).itemsize

    # Only pad when the batch is smaller than one sublane group (tiny cost).
    if n >= 8:
        n_cap = (n // 8) * 8          # largest multiple of 8 <= n
    else:
        n_cap = 8
        logits = jnp.pad(logits, ((0, 8 - n), (0, 0)))
        t_col = jnp.pad(t_col, ((0, 8 - n), (0, 0)))

    # Tile sizing: biggest row tile whose logits block fits the per-buffer
    # budget, capped at 4096 rows (amortizes the ~0.35us per-grid-step cost).
    vmem_ceiling = _vmem_ceiling_bytes()
    per_buf_budget = max(2 << 20, min(16 << 20, (vmem_ceiling - (8 << 20)) // 4))
    rows_fit = max(8, (per_buf_budget // max(1, c * itemsize)) // 8 * 8)
    cap = 4096 if max_row_tile is None else max(8, (max_row_tile // 8) * 8)
    tn = int(max(8, min(rows_fit, cap, n_cap)))

    num_tiles = pl.cdiv(n, tn)
    n_chunks = 2 if num_tiles >= 2 else 1           # megacore (v7x) parallel axis
    tiles_per_chunk = pl.cdiv(num_tiles, n_chunks)
    last_tile = num_tiles - 1

    def in_map(p, i):
        # Clamp the (possibly) overhanging last grid step of an odd tile count;
        # its rows are masked to +inf inside the kernel anyway.
        return (jnp.minimum(p * tiles_per_chunk + i, last_tile), 0)

    # Double-buffered logits + (lane-padded) target tiles, plus slack.
    needed = 2 * tn * c * itemsize + 2 * tn * 128 * 4 + (2 << 20)
    vmem_bytes = int(max(min(max(needed, 16 << 20), vmem_ceiling), needed))

    cost = pl.CostEstimate(
        flops=4 * n * c,
        transcendentals=0,
        bytes_accessed=n * c * itemsize + n * 128 * 4 + n_chunks * 4,
    )

    kernel = functools.partial(_mlm_kernel, n_valid=n, row_tile=tn,
                               tiles_per_chunk=tiles_per_chunk)
    out = pl.pallas_call(
        kernel,
        out_shape=jax.ShapeDtypeStruct((n_chunks, 1, 1), jnp.float32),
        grid_spec=pltpu.PrefetchScalarGridSpec(
            num_scalar_prefetch=0,
            grid=(n_chunks, tiles_per_chunk),
            in_specs=[
                pl.BlockSpec((tn, c), in_map),
                pl.BlockSpec((tn, 1), in_map),
            ],
            out_specs=pl.BlockSpec((1, 1, 1), lambda p, i: (p, 0, 0)),
        ),
        compiler_params=pltpu.CompilerParams(
            dimension_semantics=("parallel", "arbitrary"),
            vmem_limit_bytes=vmem_bytes,
        ),
        cost_estimate=cost,
    )(logits, t_col)
    return jnp.min(out)


def _reference(logits, target):
    logits = logits.astype(jnp.float32)
    n, c = logits.shape
    correct = logits[jnp.arange(n), target]
    mask = jax.nn.one_hot(target, c, dtype=jnp.bool_)
    wrong_max = jnp.max(jnp.where(mask, -jnp.inf, logits), axis=1)
    return jnp.min(correct - wrong_max)


if __name__ == "__main__":
    key = jax.random.PRNGKey(0)
    k1, k2, k3, k4, k5, k6 = jax.random.split(key, 6)

    # Small case (single tile, single chunk), f32.
    N, C = 8, 16
    logits = jax.random.normal(k1, (N, C), dtype=jnp.float32)
    target = jax.random.randint(k2, (N,), 0, C, dtype=jnp.int32)
    result = jax.block_until_ready(multi_label_margin(logits, target))
    ref = _reference(logits, target)
    assert jnp.allclose(result, ref, atol=1e-6), (result, ref)

    # Multi-tile, 2-chunk grid with an odd tile count (exercises the clamped
    # overhang tile, per-chunk accumulators and in-kernel row mask), bf16 input
    # kept native in HBM.  bf16 path is exact, so tolerance is tight.
    N2, C2 = 20, 128
    logits2 = jax.random.normal(k3, (N2, C2), dtype=jnp.bfloat16)
    target2 = jax.random.randint(k4, (N2,), 0, C2, dtype=jnp.int32)
    result2 = jax.block_until_ready(
        multi_label_margin(logits2, target2, max_row_tile=8))
    ref2 = _reference(logits2, target2)
    assert jnp.allclose(result2, ref2, atol=1e-6), (result2, ref2)

    # Auto-tiling path with a ragged batch (no wrapper pad), f32.
    N3, C3 = 20, 64
    logits3 = jax.random.normal(k5, (N3, C3), dtype=jnp.float32)
    target3 = jax.random.randint(k6, (N3,), 0, C3, dtype=jnp.int32)
    result3 = jax.block_until_ready(multi_label_margin(logits3, target3))
    ref3 = _reference(logits3, target3)
    assert jnp.allclose(result3, ref3, atol=1e-6), (result3, ref3)

    print("KERNEL_OK")
</pallas_src>

<mosaic_0001>
module attributes {stable_mosaic.version = 11 : i64} {
  func.func @_mlm_kernel(%arg0: i32, %arg1: i32, %arg2: memref<8x16xf32, #tpu.memory_space<vmem>>, %arg3: memref<8x1xi32, #tpu.memory_space<vmem>>, %arg4: memref<1x1x1xf32, #tpu.memory_space<vmem>>) attributes {dimension_semantics = [#tpu.dimension_semantics<parallel>, #tpu.dimension_semantics<arbitrary>], iteration_bounds = array<i64: 1, 1>, scalar_prefetch = 0 : i64, scratch_operands = 0 : i64, tpu.core_type = #tpu.core_type<tc>, window_params = [{transform_indices = @transform_0, window_bounds = array<i64: 8, 16>}, {transform_indices = @transform_1, window_bounds = array<i64: 8, 1>}, {transform_indices = @transform_2, window_bounds = array<i64: 1, 1, 1>}]} {
    %c0_i32 = arith.constant 0 : i32
    %0 = arith.cmpi eq, %arg1, %c0_i32 : i32
    %1 = arith.extui %0 : i1 to i32
    %c0_i32_0 = arith.constant 0 : i32
    %2 = arith.cmpi ne, %1, %c0_i32_0 : i32
    scf.if %2 {
      %cst_16 = arith.constant 0x7F800000 : f32
      %35 = vector.broadcast %cst_16 : f32 to vector<1x1x1xf32>
      %c0_17 = arith.constant 0 : index
      %c0_18 = arith.constant 0 : index
      %c0_19 = arith.constant 0 : index
      %36 = vector.load %arg4[%c0_17, %c0_18, %c0_19] : memref<1x1x1xf32, #tpu.memory_space<vmem>>, vector<1x1x1xf32>
      tpu.vector_store %arg4[%c0_17, %c0_18, %c0_19], %35 {strides = array<i32>} : memref<1x1x1xf32, #tpu.memory_space<vmem>>, vector<1x1x1xf32>,
    } else {
    }
    %c0 = arith.constant 0 : index
    %c0_1 = arith.constant 0 : index
    %3 = vector.load %arg2[%c0, %c0_1] : memref<8x16xf32, #tpu.memory_space<vmem>>, vector<8x16xf32>
    %c0_2 = arith.constant 0 : index
    %c0_3 = arith.constant 0 : index
    %4 = vector.load %arg3[%c0_2, %c0_3] : memref<8x1xi32, #tpu.memory_space<vmem>>, vector<8x1xi32>
    %5 = tpu.iota {dimensions = array<i32: 1>} : vector<8x16xi32>
    %6 = vector.broadcast %4 : vector<8x1xi32> to vector<8x16xi32>
    %7 = arith.cmpi eq, %5, %6 : vector<8x16xi32>
    %cst = arith.constant 0xFF800000 : f32
    %8 = vector.broadcast %cst : f32 to vector<8x16xf32>
    %9 = arith.select %7, %3, %8 : vector<8x16xi1>, vector<8x16xf32>
    %cst_4 = arith.constant dense<0xFF800000> : vector<8xf32>
    %10 = vector.multi_reduction <maximumf>, %9, %cst_4 [1] : vector<8x16xf32> to vector<8xf32>
    %11 = vector.shape_cast %10 : vector<8xf32> to vector<8x1xf32>
    %cst_5 = arith.constant 0xFF800000 : f32
    %12 = vector.broadcast %cst_5 : f32 to vector<8x16xf32>
    %13 = arith.select %7, %12, %3 : vector<8x16xi1>, vector<8x16xf32>
    %cst_6 = arith.constant dense<0xFF800000> : vector<8xf32>
    %14 = vector.multi_reduction <maximumf>, %13, %cst_6 [1] : vector<8x16xf32> to vector<8xf32>
    %15 = vector.shape_cast %14 : vector<8xf32> to vector<8x1xf32>
    %16 = arith.subf %11, %15 : vector<8x1xf32>
    %c1_i32 = arith.constant 1 : i32
    %17 = arith.muli %arg0, %c1_i32 : i32
    %18 = arith.addi %17, %arg1 : i32
    %c8_i32 = arith.constant 8 : i32
    %19 = arith.muli %18, %c8_i32 : i32
    %20 = tpu.iota {dimensions = array<i32: 0>} : vector<8x1xi32>
    %21 = vector.broadcast %19 : i32 to vector<8x1xi32>
    %22 = arith.addi %21, %20 : vector<8x1xi32>
    %c8_i32_7 = arith.constant 8 : i32
    %23 = vector.broadcast %c8_i32_7 : i32 to vector<8x1xi32>
    %24 = arith.cmpi slt, %22, %23 : vector<8x1xi32>
    %cst_8 = arith.constant 0x7F800000 : f32
    %25 = vector.broadcast %cst_8 : f32 to vector<8x1xf32>
    %26 = arith.select %24, %16, %25 : vector<8x1xi1>, vector<8x1xf32>
    %c0_9 = arith.constant 0 : index
    %c0_10 = arith.constant 0 : index
    %c0_11 = arith.constant 0 : index
    %27 = vector.load %arg4[%c0_9, %c0_10, %c0_11] : memref<1x1x1xf32, #tpu.memory_space<vmem>>, vector<1x1x1xf32>
    %28 = vector.shape_cast %26 : vector<8x1xf32> to vector<1x8x1xf32>
    %cst_12 = arith.constant dense<0x7F800000> : vector<1xf32>
    %29 = vector.multi_reduction <minimumf>, %28, %cst_12 [1, 2] : vector<1x8x1xf32> to vector<1xf32>
    %30 = vector.shape_cast %29 : vector<1xf32> to vector<1x1x1xf32>
    %31 = vector.extract %30[0, 0, 0] : f32 from vector<1x1x1xf32>
    %32 = vector.broadcast %31 : f32 to vector<1x1x1xf32>
    %33 = arith.minimumf %27, %32 : vector<1x1x1xf32>
    %c0_13 = arith.constant 0 : index
    %c0_14 = arith.constant 0 : index
    %c0_15 = arith.constant 0 : index
    %34 = vector.load %arg4[%c0_13, %c0_14, %c0_15] : memref<1x1x1xf32, #tpu.memory_space<vmem>>, vector<1x1x1xf32>
    tpu.vector_store %arg4[%c0_13, %c0_14, %c0_15], %33 {strides = array<i32>} : memref<1x1x1xf32, #tpu.memory_space<vmem>>, vector<1x1x1xf32>,
    return
  }
  func.func @transform_0(%arg0: i32, %arg1: i32) -> (i32, i32) {
    %c1_i32 = arith.constant 1 : i32
    %0 = arith.muli %arg0, %c1_i32 : i32
    %1 = arith.addi %0, %arg1 : i32
    %c0_i32 = arith.constant 0 : i32
    %2 = arith.minsi %1, %c0_i32 : i32
    %c0_i32_0 = arith.constant 0 : i32
    %c0_i32_1 = arith.constant 0 : i32
    return %2, %c0_i32_0 : i32, i32
  }
  func.func @transform_1(%arg0: i32, %arg1: i32) -> (i32, i32) {
    %c1_i32 = arith.constant 1 : i32
    %0 = arith.muli %arg0, %c1_i32 : i32
    %1 = arith.addi %0, %arg1 : i32
    %c0_i32 = arith.constant 0 : i32
    %2 = arith.minsi %1, %c0_i32 : i32
    %c0_i32_0 = arith.constant 0 : i32
    %c0_i32_1 = arith.constant 0 : i32
    return %2, %c0_i32_0 : i32, i32
  }
  func.func @transform_2(%arg0: i32, %arg1: i32) -> (i32, i32, i32) {
    %c0_i32 = arith.constant 0 : i32
    %c0_i32_0 = arith.constant 0 : i32
    %c0_i32_1 = arith.constant 0 : i32
    return %arg0, %c0_i32, %c0_i32_0 : i32, i32, i32
  }
}

</mosaic_0001>

<bundles_post_ra>
// kernel: tpu_custom_call.1
= control target key start
LH: loop header
LB: loop body
LE: loop exit
PB: predicated region body
PF: predicated region fallthrough
CT: control target
= control target key end

     0   :  { %s204_s0 = inlined_call_operand.vmem [shape: f32[8,16], index: 0, kind: input, shape index: {}]   ;;  %s205_s1 = inlined_call_operand.vmem [shape: s32[8,1], index: 1, kind: input, shape index: {}]   ;;  %s206_s2 = inlined_call_operand.hbm [shape: f32[1,1,1], index: 2, kind: output, shape index: {}]  }
   0x1   :  { %v73_v0 = vld [vmem:[%s205_s1] sm:$0xff] }
   0x2   :  { %7 = vsyncpa [#allocation3], 0  ;;  %v166_v1 = vmov 0   ;;  %v74_v2 = vlaneseq  ;;  %v72_v4 = vld [vmem:[%s204_s0] sm:$0xff]  ;;  %vm81_vm0 = vcmask 130048   ;;  %vm70_vm2 = vcmask 0  }
   0x3   :  { %141 = vset.pattern.permute.xlu0 %v166_v1  ;;  %v167_v10 = vmov inf   ;;  %s168_s0 = smov [#allocation2]  }
   0x4   :  { %77 = vperm.xlu0 %141, %v73_v0   ;;  %v75_v3 = vand.u32 127, %v74_v2  ;;  %71 = vst.msk [vmem:[#allocation2] sm:$0x1] %vm70_vm2, %v167_v10  ;;  %s116_s1 = sshll.u32 %s168_s0, 4  ;;  %s117_s1 = int_to_ptr.vmem [resolvable:$true] %s116_s1 }
   0x5   :  { %s142_s14 = scalar_lea.vmem %s117_s1, 16  ;;  %s146_s15 = scalar_lea.vmem %s117_s1, 32 }
   0x6   :  { %p143_p0 = scmp.ne.s32.totalorder %s117_s1, %s142_s14  ;;  %p147_p1 = scmp.lt.s32.totalorder %s117_s1, %s117_s1 }
   0x7   :  { %p148_p2 = scmp.lt.s32.totalorder %s146_s15, %s142_s14 }
   0x9   :  { %p149_p3 = por %p148_p2, %p147_p1 }
   0xb   :  { %v98_v20 = vld [vmem:[#allocation2] sm:$0x1]  ;;  %p150_p4 = pnand %p149_p3, %p143_p0 }
  0x83   :  { %v78_v5 = vpop.permute.xlu0 %77 }
  0x84   :  { %vm79_vm1 = vcmp.eq.s32.totalorder %v75_v3, %v78_v5 }
  0x85   :  { %v85_v6 = vsel %vm79_vm1, -inf, %v72_v4  ;;  %v80_v7 = vsel %vm79_vm1, %v72_v4, -inf }
  0x86   :  { %v86_v8 = vsel %vm81_vm0, %v85_v6, -inf  ;;  %v82_v9 = vsel %vm81_vm0, %v80_v7, -inf }
  0x87   :  { %87 = vmax.xlane.f32.xlu1 %v86_v8  ;;  %83 = vmax.xlane.f32.xlu0 %v82_v9 }
 0x114   :  { %v88_v11 = vpop.xlane.xlu1 %87  ;;  %v84_v12 = vpop.xlane.xlu0 %83 }
 0x115   :  { %v89_v13 = vsub.f32 %v84_v12, %v88_v11 }
 0x117   :  { %v99_v14 = vrot.slane %v89_v13, 4 }
 0x119   :  { %v100_v15 = vmin.f32 %v89_v13, %v99_v14 }
 0x11b   :  { %v101_v16 = vrot.slane %v100_v15, 2 }
 0x11d   :  { %v102_v17 = vmin.f32 %v100_v15, %v101_v16 }
 0x11f   :  { %v103_v18 = vrot.slane %v102_v17, 1 }
 0x121   :  { %v104_v19 = vmin.f32 %v102_v17, %v103_v18 }
 0x123   :  { %136 = vpush %v104_v19 }
 0x154   :  { %s137_s13 = spop %136 }
 0x155   :  { %v106_v21 = vstv %s137_s13 }
 0x156   :  { %v107_v22 = vmin.f32 %v98_v20, %v106_v21 }
 0x158   :  { %109 = vst.msk [vmem:[#allocation2] sm:$0x1] %vm70_vm2, %v107_v22 }
 0x159   :  { %153 = shalt.err (!%p150_p4)
}
 0x15a   :  { %s154_s18 = scalar_lea.hbm %s206_s2, 16 }
 0x15b   :  { %p155_p5 = scmp.ne.s32.totalorder %s206_s2, %s154_s18  ;;  %p158_p6 = scmp.lt.u32.totalorder %s154_s18, %s206_s2 }
 0x15d   :  { %p160_p7 = pnand %p158_p6, %p155_p5 }
 0x15f   :  { %163 = shalt.err (!%p160_p7)
}
 0x160   :  { %119 = dma.vmem_to_hbm [thread:$0]  %s117_s1, 16, %s206_s2, [#allocation3]  }
 0x161   :  { %164 = dma.done.wait [#allocation3], 16  }
 0x162   :  { %165 = vsyncadd [#allocation3], 4294967280 }
 0x163   :  { %123 = vsyncpa [#allocation3], 1 }

</bundles_post_ra>
